<compile_context>
chip_gen: v5e
topology: v5e:2x2
jax: 0.10.0
libtpu: 0.0.40
codegen_flags: <defaults>
</compile_context>

<pallas_src>
import functools

import jax
import jax.numpy as jnp
from jax.experimental import pallas as pl
from jax.experimental.pallas import tpu as pltpu


# ----------------------------- config (small) ------------------------------
VOCAB_SIZE = 128
HIDDEN_SIZE = 64
NUM_HEADS = 4
NUM_KV_HEADS = 2
HEAD_DIM = HIDDEN_SIZE // NUM_HEADS          # 16
INTERMEDIATE_SIZE = 128
NUM_LAYERS = 2
RMS_EPS = 1e-6
ROPE_THETA = 10000.0
SEQ_LEN = 8

Q_SIZE = NUM_HEADS * HEAD_DIM                # 64
KV_SIZE = NUM_KV_HEADS * HEAD_DIM            # 32
QKV_SIZE = Q_SIZE + 2 * KV_SIZE              # 128 (lane-dense)
SCALING = HEAD_DIM ** -0.5


# --------------------- fused decoder-stack Pallas kernel --------------------
def _llama_layers_kernel(
    # inputs (per grid step `layer`)
    embed_ref,        # (T, H)        initial hidden states (used at layer 0)
    cos_ref,          # (T, D)        RoPE cos, duplicated across halves
    sin_ref,          # (T, D)        RoPE sin with rotate-half sign folded in
    ln1_ref,          # (1, 1, H)     input layernorm weight
    ln2_ref,          # (1, 1, H)     post-attention layernorm weight
    wqkv_ref,         # (1, H, Q+2KV) fused qkv weight (bf16)
    wo_ref,           # (1, Q, H)     o_proj weight (bf16)
    wgu_ref,          # (1, H, 2I)    gate_up weight (bf16)
    wdown_ref,        # (1, I, H)     down_proj weight (bf16)
    finalw_ref,       # (1, H)        final norm weight
    # outputs
    o_ref,            # (T, H)
    # scratch (persists across grid steps = layers)
    x_scr,            # (T, H)  carried stream: x = h + residual
    *, eps, scale, num_heads, num_kv_heads, head_dim, inter, seq_len,
    q_size, kv_size):

    layer = pl.program_id(0)
    nlayers = pl.num_programs(0)

    # Layer 0: x = embeddings (residual starts as the input itself).
    @pl.when(layer == 0)
    def _():
        x_scr[...] = embed_ref[...]

    def rmsnorm(x, w):
        var = jnp.mean(x * x, axis=-1, keepdims=True)
        return x * jax.lax.rsqrt(var + eps) * w

    # ---------------- input layernorm on the carried stream ----------------
    x1 = x_scr[...]                                 # (T, H)
    h1 = rmsnorm(x1, ln1_ref[0])

    # ---------------- fused qkv: ONE lane-dense MXU matmul -----------------
    qkv = jnp.dot(h1.astype(jnp.bfloat16), wqkv_ref[0],
                  preferred_element_type=jnp.float32)        # (T, Q+2KV) f32

    # ------------------------- RoPE tables ---------------------------------
    half = head_dim // 2
    cos = cos_ref[...]                              # (T, D)
    sin_s = sin_ref[...]                            # (T, D), [-sin, +sin]
    cos_q = cos * scale                             # attention scale folded in
    sin_q = sin_s * scale

    def rope(xh, c, s):
        # neox rotate-half via lane slice + concat (sign lives in s).
        rot = jnp.concatenate([xh[:, half:], xh[:, :half]], axis=-1)
        return xh * c + rot * s

    # ---------------- causal GQA attention, o_proj batched -----------------
    rep = num_heads // num_kv_heads
    contract_last = (((1,), (1,)), ((), ()))        # q·kᵀ without transposing k
    row = jax.lax.broadcasted_iota(jnp.int32, (seq_len, seq_len), 0)
    col = jax.lax.broadcasted_iota(jnp.int32, (seq_len, seq_len), 1)
    causal = col <= row

    k_heads = []
    v_heads = []
    for g in range(num_kv_heads):
        kh = qkv[:, q_size + g * head_dim:q_size + (g + 1) * head_dim]
        vh = qkv[:, q_size + kv_size + g * head_dim:
                 q_size + kv_size + (g + 1) * head_dim]
        k_heads.append(rope(kh, cos, sin_s))
        v_heads.append(vh)

    o_heads = []
    for hh in range(num_heads):
        g = hh // rep                               # shared kv head (GQA)
        qh = rope(qkv[:, hh * head_dim:(hh + 1) * head_dim], cos_q, sin_q)
        s = jax.lax.dot_general(qh, k_heads[g], contract_last,
                                preferred_element_type=jnp.float32)  # (T, T)
        s = jnp.where(causal, s, -1e30)             # f32-safe mask constant
        m = jnp.max(s, axis=-1, keepdims=True)
        p = jnp.exp(s - m)
        inv = pl.reciprocal(jnp.sum(p, axis=-1, keepdims=True), approx=True)
        o_heads.append(jnp.dot(p * inv, v_heads[g],
                               preferred_element_type=jnp.float32))  # (T, D)
    o = jnp.concatenate(o_heads, axis=-1)           # (T, Q)

    h_attn = jnp.dot(o.astype(jnp.bfloat16), wo_ref[0],
                     preferred_element_type=jnp.float32)             # (T, H)

    # ------------- post-attention layernorm (fused residual add) -----------
    x2 = h_attn + x1
    h2 = rmsnorm(x2, ln2_ref[0])

    # -------------------- MLP: gate_up -> SiLU*mul -> down ------------------
    gu = jnp.dot(h2.astype(jnp.bfloat16), wgu_ref[0],
                 preferred_element_type=jnp.float32)                 # (T, 2I)
    gate = gu[:, :inter]
    up = gu[:, inter:]
    act = gate * jax.nn.sigmoid(gate) * up
    h3 = jnp.dot(act.astype(jnp.bfloat16), wdown_ref[0],
                 preferred_element_type=jnp.float32)                 # (T, H)

    # --------------- carry single stream to the next layer ------------------
    x_next = h3 + x2
    x_scr[...] = x_next

    # -------------------- final norm after the last layer ------------------
    @pl.when(layer == nlayers - 1)
    def _():
        o_ref[...] = rmsnorm(x_next, finalw_ref[...])


# ------------------------------ RoPE glue -----------------------------------
def _rope_tables(positions, head_dim, theta):
    """cos (T, D) duplicated across halves; sin (T, D) with rotate-half sign."""
    half = head_dim // 2
    inv_freq = 1.0 / (theta ** (jnp.arange(half, dtype=jnp.float32) / half))
    freqs = positions.astype(jnp.float32)[:, None] * inv_freq[None, :]  # (T, half)
    cos = jnp.concatenate([jnp.cos(freqs), jnp.cos(freqs)], axis=-1)    # (T, D)
    sin = jnp.sin(freqs)
    sin_signed = jnp.concatenate([-sin, sin], axis=-1)                  # (T, D)
    return cos, sin_signed


# ------------------------------ parameter init -------------------------------
def init_params(key):
    def w(k, shape, scale=0.02):
        return (scale * jax.random.normal(k, shape, dtype=jnp.float32)
                ).astype(jnp.bfloat16)

    k_embed, k_w = jax.random.split(key)
    ks = jax.random.split(k_w, 4)
    return {
        "embed": 0.02 * jax.random.normal(k_embed, (VOCAB_SIZE, HIDDEN_SIZE),
                                          dtype=jnp.float32),
        "ln1_w": jnp.ones((NUM_LAYERS, 1, HIDDEN_SIZE), jnp.float32),
        "ln2_w": jnp.ones((NUM_LAYERS, 1, HIDDEN_SIZE), jnp.float32),
        "wqkv": w(ks[0], (NUM_LAYERS, HIDDEN_SIZE, QKV_SIZE)),
        "wo": w(ks[1], (NUM_LAYERS, Q_SIZE, HIDDEN_SIZE)),
        "w_gate_up": w(ks[2], (NUM_LAYERS, HIDDEN_SIZE, 2 * INTERMEDIATE_SIZE)),
        "w_down": w(ks[3], (NUM_LAYERS, INTERMEDIATE_SIZE, HIDDEN_SIZE)),
        "final_norm_w": jnp.ones((1, HIDDEN_SIZE), jnp.float32),
    }


# ------------------------------- model forward -------------------------------
def llama_forward(params, input_ids, positions):
    T = input_ids.shape[0]
    # embedding lookup (glue gather)
    h0 = jnp.take(params["embed"], input_ids, axis=0)                 # (T, H)

    # RoPE tables (trig in glue; rotation/sign applied inside the kernel)
    cos, sin_signed = _rope_tables(positions, HEAD_DIM, ROPE_THETA)

    kernel = functools.partial(
        _llama_layers_kernel, eps=RMS_EPS, scale=SCALING,
        num_heads=NUM_HEADS, num_kv_heads=NUM_KV_HEADS,
        head_dim=HEAD_DIM, inter=INTERMEDIATE_SIZE, seq_len=T,
        q_size=Q_SIZE, kv_size=KV_SIZE)

    out = pl.pallas_call(
        kernel,
        out_shape=jax.ShapeDtypeStruct((T, HIDDEN_SIZE), jnp.float32),
        grid_spec=pltpu.PrefetchScalarGridSpec(
            num_scalar_prefetch=0,
            grid=(NUM_LAYERS,),
            in_specs=[
                pl.BlockSpec((T, HIDDEN_SIZE), lambda l: (0, 0)),          # embed
                pl.BlockSpec((T, HEAD_DIM), lambda l: (0, 0)),             # cos
                pl.BlockSpec((T, HEAD_DIM), lambda l: (0, 0)),             # sin
                pl.BlockSpec((1, 1, HIDDEN_SIZE), lambda l: (l, 0, 0)),    # ln1
                pl.BlockSpec((1, 1, HIDDEN_SIZE), lambda l: (l, 0, 0)),    # ln2
                pl.BlockSpec((1, HIDDEN_SIZE, QKV_SIZE),
                             lambda l: (l, 0, 0)),                         # wqkv
                pl.BlockSpec((1, Q_SIZE, HIDDEN_SIZE), lambda l: (l, 0, 0)),  # wo
                pl.BlockSpec((1, HIDDEN_SIZE, 2 * INTERMEDIATE_SIZE),
                             lambda l: (l, 0, 0)),                         # gate_up
                pl.BlockSpec((1, INTERMEDIATE_SIZE, HIDDEN_SIZE),
                             lambda l: (l, 0, 0)),                         # down
                pl.BlockSpec((1, HIDDEN_SIZE), lambda l: (0, 0)),          # final
            ],
            out_specs=pl.BlockSpec((T, HIDDEN_SIZE), lambda l: (0, 0)),
            scratch_shapes=[pltpu.VMEM((T, HIDDEN_SIZE), jnp.float32)],    # x stream
        ),
        compiler_params=pltpu.CompilerParams(
            dimension_semantics=("arbitrary",),      # layers are sequential
            vmem_limit_bytes=64 * 1024 * 1024),
    )(h0, cos, sin_signed,
      params["ln1_w"], params["ln2_w"],
      params["wqkv"], params["wo"], params["w_gate_up"], params["w_down"],
      params["final_norm_w"])
    return out


# ---------------------- pure-JAX reference (for checking) --------------------
def llama_forward_ref(params, input_ids, positions):
    f32 = lambda a: a.astype(jnp.float32)

    def rms(x, w):
        return x * jax.lax.rsqrt(jnp.mean(x * x, -1, keepdims=True) + RMS_EPS) * w

    half = HEAD_DIM // 2
    inv_freq = 1.0 / (ROPE_THETA ** (jnp.arange(half, dtype=jnp.float32) / half))
    freqs = positions.astype(jnp.float32)[:, None] * inv_freq[None, :]
    cos = jnp.cos(freqs)[:, None, :]
    sin = jnp.sin(freqs)[:, None, :]

    def rope(x, nh):
        t = x.shape[0]
        xh = x.reshape(t, nh, HEAD_DIM)
        x1, x2 = xh[..., :half], xh[..., half:]
        return jnp.concatenate([x1 * cos - x2 * sin,
                                x2 * cos + x1 * sin], -1).reshape(t, -1)

    h = jnp.take(params["embed"], input_ids, axis=0)
    residual = None
    T = h.shape[0]
    for li in range(NUM_LAYERS):
        if residual is None:
            residual = h
            hn = rms(h, params["ln1_w"][li, 0])
        else:
            x = h + residual
            residual = x
            hn = rms(x, params["ln1_w"][li, 0])
        qkv = hn @ f32(params["wqkv"][li])
        q = qkv[:, :Q_SIZE]
        k = qkv[:, Q_SIZE:Q_SIZE + KV_SIZE]
        v = qkv[:, Q_SIZE + KV_SIZE:]
        q = rope(q, NUM_HEADS)
        k = rope(k, NUM_KV_HEADS)
        qh = q.reshape(T, NUM_HEADS, HEAD_DIM).transpose(1, 0, 2)
        kh = k.reshape(T, NUM_KV_HEADS, HEAD_DIM).transpose(1, 0, 2)
        vh = v.reshape(T, NUM_KV_HEADS, HEAD_DIM).transpose(1, 0, 2)
        rep = NUM_HEADS // NUM_KV_HEADS
        kh = jnp.repeat(kh, rep, 0)
        vh = jnp.repeat(vh, rep, 0)
        s = jnp.einsum('hqd,hkd->hqk', qh, kh) * SCALING
        mask = jnp.tril(jnp.ones((T, T), bool))
        s = jnp.where(mask, s, -1e30)
        p = jax.nn.softmax(s, axis=-1)
        ao = jnp.einsum('hqk,hkd->hqd', p, vh).transpose(1, 0, 2).reshape(T, Q_SIZE)
        h = ao @ f32(params["wo"][li])
        x = h + residual
        residual = x
        hn = rms(x, params["ln2_w"][li, 0])
        gu = hn @ f32(params["w_gate_up"][li])
        g, u = gu[:, :INTERMEDIATE_SIZE], gu[:, INTERMEDIATE_SIZE:]
        h = (g * jax.nn.sigmoid(g) * u) @ f32(params["w_down"][li])
    x = h + residual
    return rms(x, params["final_norm_w"])


# ------------------------------------ main ------------------------------------
if __name__ == "__main__":
    key = jax.random.PRNGKey(0)
    pkey, ikey = jax.random.split(key)
    params = init_params(pkey)

    input_ids = jax.random.randint(ikey, (SEQ_LEN,), 0, VOCAB_SIZE, dtype=jnp.int32)
    positions = jnp.arange(SEQ_LEN, dtype=jnp.int32)

    out = jax.jit(llama_forward)(params, input_ids, positions)
    out = jax.block_until_ready(out)

    ref = llama_forward_ref(params, input_ids, positions)

    assert out.shape == (SEQ_LEN, HIDDEN_SIZE)
    assert jnp.isfinite(out).all()
    assert jnp.allclose(out, ref, rtol=5e-2, atol=5e-2)
    print("KERNEL_OK")
</pallas_src>

<mosaic_0001>
module attributes {stable_mosaic.version = 11 : i64} {
  func.func @_llama_layers_kernel(%arg0: i32, %arg1: memref<8x64xf32, #tpu.memory_space<vmem>>, %arg2: memref<8x16xf32, #tpu.memory_space<vmem>>, %arg3: memref<8x16xf32, #tpu.memory_space<vmem>>, %arg4: memref<1x1x64xf32, #tpu.memory_space<vmem>>, %arg5: memref<1x1x64xf32, #tpu.memory_space<vmem>>, %arg6: memref<1x64x128xbf16, #tpu.memory_space<vmem>>, %arg7: memref<1x64x64xbf16, #tpu.memory_space<vmem>>, %arg8: memref<1x64x256xbf16, #tpu.memory_space<vmem>>, %arg9: memref<1x128x64xbf16, #tpu.memory_space<vmem>>, %arg10: memref<1x64xf32, #tpu.memory_space<vmem>>, %arg11: memref<8x64xf32, #tpu.memory_space<vmem>>, %arg12: memref<8x64xf32, #tpu.memory_space<vmem>>) attributes {dimension_semantics = [#tpu.dimension_semantics<arbitrary>], iteration_bounds = array<i64: 2>, scalar_prefetch = 0 : i64, scratch_operands = 1 : i64, tpu.core_type = #tpu.core_type<tc>, window_params = [{pipeline_mode = #tpu.pipeline_mode<synchronous>, transform_indices = @transform_0, window_bounds = array<i64: 8, 64>}, {pipeline_mode = #tpu.pipeline_mode<synchronous>, transform_indices = @transform_1, window_bounds = array<i64: 8, 16>}, {pipeline_mode = #tpu.pipeline_mode<synchronous>, transform_indices = @transform_2, window_bounds = array<i64: 8, 16>}, {transform_indices = @transform_3, window_bounds = array<i64: 1, 1, 64>}, {transform_indices = @transform_4, window_bounds = array<i64: 1, 1, 64>}, {transform_indices = @transform_5, window_bounds = array<i64: 1, 64, 128>}, {transform_indices = @transform_6, window_bounds = array<i64: 1, 64, 64>}, {transform_indices = @transform_7, window_bounds = array<i64: 1, 64, 256>}, {transform_indices = @transform_8, window_bounds = array<i64: 1, 128, 64>}, {pipeline_mode = #tpu.pipeline_mode<synchronous>, transform_indices = @transform_9, window_bounds = array<i64: 1, 64>}, {pipeline_mode = #tpu.pipeline_mode<synchronous>, transform_indices = @transform_10, window_bounds = array<i64: 8, 64>}]} {
    %c0_i32 = arith.constant 0 : i32
    %0 = arith.cmpi eq, %arg0, %c0_i32 : i32
    %1 = arith.extui %0 : i1 to i32
    %c0_i32_0 = arith.constant 0 : i32
    %2 = arith.cmpi ne, %1, %c0_i32_0 : i32
    scf.if %2 {
      %c0_59 = arith.constant 0 : index
      %c0_60 = arith.constant 0 : index
      %173 = vector.load %arg1[%c0_59, %c0_60] : memref<8x64xf32, #tpu.memory_space<vmem>>, vector<8x64xf32>
      %c0_61 = arith.constant 0 : index
      %c0_62 = arith.constant 0 : index
      %174 = vector.load %arg12[%c0_61, %c0_62] : memref<8x64xf32, #tpu.memory_space<vmem>>, vector<8x64xf32>
      tpu.vector_store %arg12[%c0_61, %c0_62], %173 {strides = array<i32>} : memref<8x64xf32, #tpu.memory_space<vmem>>, vector<8x64xf32>,
    } else {
    }
    %c0 = arith.constant 0 : index
    %c0_1 = arith.constant 0 : index
    %3 = vector.load %arg12[%c0, %c0_1] : memref<8x64xf32, #tpu.memory_space<vmem>>, vector<8x64xf32>
    %c0_2 = arith.constant 0 : index
    %c0_3 = arith.constant 0 : index
    %c0_4 = arith.constant 0 : index
    %4 = vector.load %arg4[%c0_2, %c0_3, %c0_4] : memref<1x1x64xf32, #tpu.memory_space<vmem>>, vector<1x1x64xf32>
    %5 = vector.shape_cast %4 : vector<1x1x64xf32> to vector<1x64xf32>
    %6 = arith.mulf %3, %3 : vector<8x64xf32>
    %cst = arith.constant dense<0.000000e+00> : vector<8xf32>
    %7 = vector.multi_reduction <add>, %6, %cst [1] : vector<8x64xf32> to vector<8xf32>
    %8 = vector.shape_cast %7 : vector<8xf32> to vector<8x1xf32>
    %cst_5 = arith.constant 6.400000e+01 : f32
    %9 = vector.broadcast %cst_5 : f32 to vector<8x1xf32>
    %10 = arith.divf %8, %9 : vector<8x1xf32>
    %cst_6 = arith.constant 9.99999997E-7 : f32
    %11 = vector.broadcast %cst_6 : f32 to vector<8x1xf32>
    %12 = arith.addf %10, %11 : vector<8x1xf32>
    %13 = math.rsqrt %12 : vector<8x1xf32>
    %14 = vector.broadcast %13 : vector<8x1xf32> to vector<8x64xf32>
    %15 = arith.mulf %3, %14 : vector<8x64xf32>
    %16 = vector.broadcast %5 : vector<1x64xf32> to vector<8x64xf32>
    %17 = arith.mulf %15, %16 : vector<8x64xf32>
    %18 = arith.truncf %17 : vector<8x64xf32> to vector<8x64xbf16>
    %c0_7 = arith.constant 0 : index
    %c0_8 = arith.constant 0 : index
    %c0_9 = arith.constant 0 : index
    %19 = vector.load %arg6[%c0_7, %c0_8, %c0_9] : memref<1x64x128xbf16, #tpu.memory_space<vmem>>, vector<1x64x128xbf16>
    %20 = vector.shape_cast %19 : vector<1x64x128xbf16> to vector<64x128xbf16>
    %cst_10 = arith.constant dense<0.000000e+00> : vector<8x128xf32>
    %21 = tpu.matmul %18, %20, %cst_10 {dimension_numbers = #tpu.dot_dimension_numbers<[1], [0], [0], [1], [0, 0, 1, 1], [], []>} : vector<8x64xbf16>, vector<64x128xbf16>, vector<8x128xf32> -> vector<8x128xf32>
    %c0_11 = arith.constant 0 : index
    %c0_12 = arith.constant 0 : index
    %22 = vector.load %arg2[%c0_11, %c0_12] : memref<8x16xf32, #tpu.memory_space<vmem>>, vector<8x16xf32>
    %c0_13 = arith.constant 0 : index
    %c0_14 = arith.constant 0 : index
    %23 = vector.load %arg3[%c0_13, %c0_14] : memref<8x16xf32, #tpu.memory_space<vmem>>, vector<8x16xf32>
    %cst_15 = arith.constant 2.500000e-01 : f32
    %24 = vector.broadcast %cst_15 : f32 to vector<8x16xf32>
    %25 = arith.mulf %22, %24 : vector<8x16xf32>
    %cst_16 = arith.constant 2.500000e-01 : f32
    %26 = vector.broadcast %cst_16 : f32 to vector<8x16xf32>
    %27 = arith.mulf %23, %26 : vector<8x16xf32>
    %28 = tpu.iota {dimensions = array<i32: 0>} : vector<8x8xi32>
    %29 = tpu.iota {dimensions = array<i32: 1>} : vector<8x8xi32>
    %30 = arith.cmpi sle, %29, %28 : vector<8x8xi32>
    %31 = vector.extract_strided_slice %21 {offsets = [0, 64], sizes = [8, 16], strides = [1, 1]} : vector<8x128xf32> to vector<8x16xf32>
    %32 = vector.extract_strided_slice %21 {offsets = [0, 96], sizes = [8, 16], strides = [1, 1]} : vector<8x128xf32> to vector<8x16xf32>
    %33 = vector.extract_strided_slice %31 {offsets = [0, 8], sizes = [8, 8], strides = [1, 1]} : vector<8x16xf32> to vector<8x8xf32>
    %34 = vector.extract_strided_slice %31 {offsets = [0, 0], sizes = [8, 8], strides = [1, 1]} : vector<8x16xf32> to vector<8x8xf32>
    %35 = tpu.concatenate %33, %34 in 1 : vector<8x8xf32>, vector<8x8xf32> -> vector<8x16xf32>
    %36 = arith.mulf %31, %22 : vector<8x16xf32>
    %37 = arith.mulf %35, %23 : vector<8x16xf32>
    %38 = arith.addf %36, %37 : vector<8x16xf32>
    %39 = vector.extract_strided_slice %21 {offsets = [0, 80], sizes = [8, 16], strides = [1, 1]} : vector<8x128xf32> to vector<8x16xf32>
    %40 = vector.extract_strided_slice %21 {offsets = [0, 112], sizes = [8, 16], strides = [1, 1]} : vector<8x128xf32> to vector<8x16xf32>
    %41 = vector.extract_strided_slice %39 {offsets = [0, 8], sizes = [8, 8], strides = [1, 1]} : vector<8x16xf32> to vector<8x8xf32>
    %42 = vector.extract_strided_slice %39 {offsets = [0, 0], sizes = [8, 8], strides = [1, 1]} : vector<8x16xf32> to vector<8x8xf32>
    %43 = tpu.concatenate %41, %42 in 1 : vector<8x8xf32>, vector<8x8xf32> -> vector<8x16xf32>
    %44 = arith.mulf %39, %22 : vector<8x16xf32>
    %45 = arith.mulf %43, %23 : vector<8x16xf32>
    %46 = arith.addf %44, %45 : vector<8x16xf32>
    %47 = vector.extract_strided_slice %21 {offsets = [0, 0], sizes = [8, 16], strides = [1, 1]} : vector<8x128xf32> to vector<8x16xf32>
    %48 = vector.extract_strided_slice %47 {offsets = [0, 8], sizes = [8, 8], strides = [1, 1]} : vector<8x16xf32> to vector<8x8xf32>
    %49 = vector.extract_strided_slice %47 {offsets = [0, 0], sizes = [8, 8], strides = [1, 1]} : vector<8x16xf32> to vector<8x8xf32>
    %50 = tpu.concatenate %48, %49 in 1 : vector<8x8xf32>, vector<8x8xf32> -> vector<8x16xf32>
    %51 = arith.mulf %47, %25 : vector<8x16xf32>
    %52 = arith.mulf %50, %27 : vector<8x16xf32>
    %53 = arith.addf %51, %52 : vector<8x16xf32>
    %cst_17 = arith.constant dense<0.000000e+00> : vector<8x8xf32>
    %54 = tpu.matmul %53, %38, %cst_17 {dimension_numbers = #tpu.dot_dimension_numbers<[1], [1], [0], [0], [0, 0, 1, 0], [], []>} : vector<8x16xf32>, vector<8x16xf32>, vector<8x8xf32> -> vector<8x8xf32>
    %cst_18 = arith.constant -1.000000e+30 : f32
    %55 = vector.broadcast %cst_18 : f32 to vector<8x8xf32>
    %56 = arith.select %30, %54, %55 : vector<8x8xi1>, vector<8x8xf32>
    %cst_19 = arith.constant dense<0xFF800000> : vector<8xf32>
    %57 = vector.multi_reduction <maximumf>, %56, %cst_19 [1] : vector<8x8xf32> to vector<8xf32>
    %58 = vector.shape_cast %57 : vector<8xf32> to vector<8x1xf32>
    %59 = vector.broadcast %58 : vector<8x1xf32> to vector<8x8xf32>
    %60 = arith.subf %56, %59 : vector<8x8xf32>
    %61 = math.exp %60 : vector<8x8xf32>
    %cst_20 = arith.constant dense<0.000000e+00> : vector<8xf32>
    %62 = vector.multi_reduction <add>, %61, %cst_20 [1] : vector<8x8xf32> to vector<8xf32>
    %63 = vector.shape_cast %62 : vector<8xf32> to vector<8x1xf32>
    %64 = tpu.reciprocal %63 {approx = true} : vector<8x1xf32> -> vector<8x1xf32>
    %65 = vector.broadcast %64 : vector<8x1xf32> to vector<8x8xf32>
    %66 = arith.mulf %61, %65 : vector<8x8xf32>
    %cst_21 = arith.constant dense<0.000000e+00> : vector<8x16xf32>
    %67 = tpu.matmul %66, %32, %cst_21 {dimension_numbers = #tpu.dot_dimension_numbers<[1], [0], [0], [1], [0, 0, 1, 1], [], []>} : vector<8x8xf32>, vector<8x16xf32>, vector<8x16xf32> -> vector<8x16xf32>
    %68 = vector.extract_strided_slice %21 {offsets = [0, 16], sizes = [8, 16], strides = [1, 1]} : vector<8x128xf32> to vector<8x16xf32>
    %69 = vector.extract_strided_slice %68 {offsets = [0, 8], sizes = [8, 8], strides = [1, 1]} : vector<8x16xf32> to vector<8x8xf32>
    %70 = vector.extract_strided_slice %68 {offsets = [0, 0], sizes = [8, 8], strides = [1, 1]} : vector<8x16xf32> to vector<8x8xf32>
    %71 = tpu.concatenate %69, %70 in 1 : vector<8x8xf32>, vector<8x8xf32> -> vector<8x16xf32>
    %72 = arith.mulf %68, %25 : vector<8x16xf32>
    %73 = arith.mulf %71, %27 : vector<8x16xf32>
    %74 = arith.addf %72, %73 : vector<8x16xf32>
    %cst_22 = arith.constant dense<0.000000e+00> : vector<8x8xf32>
    %75 = tpu.matmul %74, %38, %cst_22 {dimension_numbers = #tpu.dot_dimension_numbers<[1], [1], [0], [0], [0, 0, 1, 0], [], []>} : vector<8x16xf32>, vector<8x16xf32>, vector<8x8xf32> -> vector<8x8xf32>
    %cst_23 = arith.constant -1.000000e+30 : f32
    %76 = vector.broadcast %cst_23 : f32 to vector<8x8xf32>
    %77 = arith.select %30, %75, %76 : vector<8x8xi1>, vector<8x8xf32>
    %cst_24 = arith.constant dense<0xFF800000> : vector<8xf32>
    %78 = vector.multi_reduction <maximumf>, %77, %cst_24 [1] : vector<8x8xf32> to vector<8xf32>
    %79 = vector.shape_cast %78 : vector<8xf32> to vector<8x1xf32>
    %80 = vector.broadcast %79 : vector<8x1xf32> to vector<8x8xf32>
    %81 = arith.subf %77, %80 : vector<8x8xf32>
    %82 = math.exp %81 : vector<8x8xf32>
    %cst_25 = arith.constant dense<0.000000e+00> : vector<8xf32>
    %83 = vector.multi_reduction <add>, %82, %cst_25 [1] : vector<8x8xf32> to vector<8xf32>
    %84 = vector.shape_cast %83 : vector<8xf32> to vector<8x1xf32>
    %85 = tpu.reciprocal %84 {approx = true} : vector<8x1xf32> -> vector<8x1xf32>
    %86 = vector.broadcast %85 : vector<8x1xf32> to vector<8x8xf32>
    %87 = arith.mulf %82, %86 : vector<8x8xf32>
    %cst_26 = arith.constant dense<0.000000e+00> : vector<8x16xf32>
    %88 = tpu.matmul %87, %32, %cst_26 {dimension_numbers = #tpu.dot_dimension_numbers<[1], [0], [0], [1], [0, 0, 1, 1], [], []>} : vector<8x8xf32>, vector<8x16xf32>, vector<8x16xf32> -> vector<8x16xf32>
    %89 = vector.extract_strided_slice %21 {offsets = [0, 32], sizes = [8, 16], strides = [1, 1]} : vector<8x128xf32> to vector<8x16xf32>
    %90 = vector.extract_strided_slice %89 {offsets = [0, 8], sizes = [8, 8], strides = [1, 1]} : vector<8x16xf32> to vector<8x8xf32>
    %91 = vector.extract_strided_slice %89 {offsets = [0, 0], sizes = [8, 8], strides = [1, 1]} : vector<8x16xf32> to vector<8x8xf32>
    %92 = tpu.concatenate %90, %91 in 1 : vector<8x8xf32>, vector<8x8xf32> -> vector<8x16xf32>
    %93 = arith.mulf %89, %25 : vector<8x16xf32>
    %94 = arith.mulf %92, %27 : vector<8x16xf32>
    %95 = arith.addf %93, %94 : vector<8x16xf32>
    %cst_27 = arith.constant dense<0.000000e+00> : vector<8x8xf32>
    %96 = tpu.matmul %95, %46, %cst_27 {dimension_numbers = #tpu.dot_dimension_numbers<[1], [1], [0], [0], [0, 0, 1, 0], [], []>} : vector<8x16xf32>, vector<8x16xf32>, vector<8x8xf32> -> vector<8x8xf32>
    %cst_28 = arith.constant -1.000000e+30 : f32
    %97 = vector.broadcast %cst_28 : f32 to vector<8x8xf32>
    %98 = arith.select %30, %96, %97 : vector<8x8xi1>, vector<8x8xf32>
    %cst_29 = arith.constant dense<0xFF800000> : vector<8xf32>
    %99 = vector.multi_reduction <maximumf>, %98, %cst_29 [1] : vector<8x8xf32> to vector<8xf32>
    %100 = vector.shape_cast %99 : vector<8xf32> to vector<8x1xf32>
    %101 = vector.broadcast %100 : vector<8x1xf32> to vector<8x8xf32>
    %102 = arith.subf %98, %101 : vector<8x8xf32>
    %103 = math.exp %102 : vector<8x8xf32>
    %cst_30 = arith.constant dense<0.000000e+00> : vector<8xf32>
    %104 = vector.multi_reduction <add>, %103, %cst_30 [1] : vector<8x8xf32> to vector<8xf32>
    %105 = vector.shape_cast %104 : vector<8xf32> to vector<8x1xf32>
    %106 = tpu.reciprocal %105 {approx = true} : vector<8x1xf32> -> vector<8x1xf32>
    %107 = vector.broadcast %106 : vector<8x1xf32> to vector<8x8xf32>
    %108 = arith.mulf %103, %107 : vector<8x8xf32>
    %cst_31 = arith.constant dense<0.000000e+00> : vector<8x16xf32>
    %109 = tpu.matmul %108, %40, %cst_31 {dimension_numbers = #tpu.dot_dimension_numbers<[1], [0], [0], [1], [0, 0, 1, 1], [], []>} : vector<8x8xf32>, vector<8x16xf32>, vector<8x16xf32> -> vector<8x16xf32>
    %110 = vector.extract_strided_slice %21 {offsets = [0, 48], sizes = [8, 16], strides = [1, 1]} : vector<8x128xf32> to vector<8x16xf32>
    %111 = vector.extract_strided_slice %110 {offsets = [0, 8], sizes = [8, 8], strides = [1, 1]} : vector<8x16xf32> to vector<8x8xf32>
    %112 = vector.extract_strided_slice %110 {offsets = [0, 0], sizes = [8, 8], strides = [1, 1]} : vector<8x16xf32> to vector<8x8xf32>
    %113 = tpu.concatenate %111, %112 in 1 : vector<8x8xf32>, vector<8x8xf32> -> vector<8x16xf32>
    %114 = arith.mulf %110, %25 : vector<8x16xf32>
    %115 = arith.mulf %113, %27 : vector<8x16xf32>
    %116 = arith.addf %114, %115 : vector<8x16xf32>
    %cst_32 = arith.constant dense<0.000000e+00> : vector<8x8xf32>
    %117 = tpu.matmul %116, %46, %cst_32 {dimension_numbers = #tpu.dot_dimension_numbers<[1], [1], [0], [0], [0, 0, 1, 0], [], []>} : vector<8x16xf32>, vector<8x16xf32>, vector<8x8xf32> -> vector<8x8xf32>
    %cst_33 = arith.constant -1.000000e+30 : f32
    %118 = vector.broadcast %cst_33 : f32 to vector<8x8xf32>
    %119 = arith.select %30, %117, %118 : vector<8x8xi1>, vector<8x8xf32>
    %cst_34 = arith.constant dense<0xFF800000> : vector<8xf32>
    %120 = vector.multi_reduction <maximumf>, %119, %cst_34 [1] : vector<8x8xf32> to vector<8xf32>
    %121 = vector.shape_cast %120 : vector<8xf32> to vector<8x1xf32>
    %122 = vector.broadcast %121 : vector<8x1xf32> to vector<8x8xf32>
    %123 = arith.subf %119, %122 : vector<8x8xf32>
    %124 = math.exp %123 : vector<8x8xf32>
    %cst_35 = arith.constant dense<0.000000e+00> : vector<8xf32>
    %125 = vector.multi_reduction <add>, %124, %cst_35 [1] : vector<8x8xf32> to vector<8xf32>
    %126 = vector.shape_cast %125 : vector<8xf32> to vector<8x1xf32>
    %127 = tpu.reciprocal %126 {approx = true} : vector<8x1xf32> -> vector<8x1xf32>
    %128 = vector.broadcast %127 : vector<8x1xf32> to vector<8x8xf32>
    %129 = arith.mulf %124, %128 : vector<8x8xf32>
    %cst_36 = arith.constant dense<0.000000e+00> : vector<8x16xf32>
    %130 = tpu.matmul %129, %40, %cst_36 {dimension_numbers = #tpu.dot_dimension_numbers<[1], [0], [0], [1], [0, 0, 1, 1], [], []>} : vector<8x8xf32>, vector<8x16xf32>, vector<8x16xf32> -> vector<8x16xf32>
    %131 = tpu.concatenate %67, %88, %109, %130 in 1 : vector<8x16xf32>, vector<8x16xf32>, vector<8x16xf32>, vector<8x16xf32> -> vector<8x64xf32>
    %132 = arith.truncf %131 : vector<8x64xf32> to vector<8x64xbf16>
    %c0_37 = arith.constant 0 : index
    %c0_38 = arith.constant 0 : index
    %c0_39 = arith.constant 0 : index
    %133 = vector.load %arg7[%c0_37, %c0_38, %c0_39] : memref<1x64x64xbf16, #tpu.memory_space<vmem>>, vector<1x64x64xbf16>
    %134 = vector.shape_cast %133 : vector<1x64x64xbf16> to vector<64x64xbf16>
    %cst_40 = arith.constant dense<0.000000e+00> : vector<8x64xf32>
    %135 = tpu.matmul %132, %134, %cst_40 {dimension_numbers = #tpu.dot_dimension_numbers<[1], [0], [0], [1], [0, 0, 1, 1], [], []>} : vector<8x64xbf16>, vector<64x64xbf16>, vector<8x64xf32> -> vector<8x64xf32>
    %136 = arith.addf %135, %3 : vector<8x64xf32>
    %c0_41 = arith.constant 0 : index
    %c0_42 = arith.constant 0 : index
    %c0_43 = arith.constant 0 : index
    %137 = vector.load %arg5[%c0_41, %c0_42, %c0_43] : memref<1x1x64xf32, #tpu.memory_space<vmem>>, vector<1x1x64xf32>
    %138 = vector.shape_cast %137 : vector<1x1x64xf32> to vector<1x64xf32>
    %139 = arith.mulf %136, %136 : vector<8x64xf32>
    %cst_44 = arith.constant dense<0.000000e+00> : vector<8xf32>
    %140 = vector.multi_reduction <add>, %139, %cst_44 [1] : vector<8x64xf32> to vector<8xf32>
    %141 = vector.shape_cast %140 : vector<8xf32> to vector<8x1xf32>
    %cst_45 = arith.constant 6.400000e+01 : f32
    %142 = vector.broadcast %cst_45 : f32 to vector<8x1xf32>
    %143 = arith.divf %141, %142 : vector<8x1xf32>
    %cst_46 = arith.constant 9.99999997E-7 : f32
    %144 = vector.broadcast %cst_46 : f32 to vector<8x1xf32>
    %145 = arith.addf %143, %144 : vector<8x1xf32>
    %146 = math.rsqrt %145 : vector<8x1xf32>
    %147 = vector.broadcast %146 : vector<8x1xf32> to vector<8x64xf32>
    %148 = arith.mulf %136, %147 : vector<8x64xf32>
    %149 = vector.broadcast %138 : vector<1x64xf32> to vector<8x64xf32>
    %150 = arith.mulf %148, %149 : vector<8x64xf32>
    %151 = arith.truncf %150 : vector<8x64xf32> to vector<8x64xbf16>
    %c0_47 = arith.constant 0 : index
    %c0_48 = arith.constant 0 : index
    %c0_49 = arith.constant 0 : index
    %152 = vector.load %arg8[%c0_47, %c0_48, %c0_49] : memref<1x64x256xbf16, #tpu.memory_space<vmem>>, vector<1x64x256xbf16>
    %153 = vector.shape_cast %152 : vector<1x64x256xbf16> to vector<64x256xbf16>
    %cst_50 = arith.constant dense<0.000000e+00> : vector<8x256xf32>
    %154 = tpu.matmul %151, %153, %cst_50 {dimension_numbers = #tpu.dot_dimension_numbers<[1], [0], [0], [1], [0, 0, 1, 1], [], []>} : vector<8x64xbf16>, vector<64x256xbf16>, vector<8x256xf32> -> vector<8x256xf32>
    %155 = vector.extract_strided_slice %154 {offsets = [0, 0], sizes = [8, 128], strides = [1, 1]} : vector<8x256xf32> to vector<8x128xf32>
    %156 = vector.extract_strided_slice %154 {offsets = [0, 128], sizes = [8, 128], strides = [1, 1]} : vector<8x256xf32> to vector<8x128xf32>
    %157 = arith.negf %155 : vector<8x128xf32>
    %158 = math.exp %157 : vector<8x128xf32>
    %cst_51 = arith.constant 1.000000e+00 : f32
    %159 = vector.broadcast %cst_51 : f32 to vector<8x128xf32>
    %160 = arith.addf %159, %158 : vector<8x128xf32>
    %161 = arith.divf %159, %160 : vector<8x128xf32>
    %162 = arith.mulf %155, %161 : vector<8x128xf32>
    %163 = arith.mulf %162, %156 : vector<8x128xf32>
    %164 = arith.truncf %163 : vector<8x128xf32> to vector<8x128xbf16>
    %c0_52 = arith.constant 0 : index
    %c0_53 = arith.constant 0 : index
    %c0_54 = arith.constant 0 : index
    %165 = vector.load %arg9[%c0_52, %c0_53, %c0_54] : memref<1x128x64xbf16, #tpu.memory_space<vmem>>, vector<1x128x64xbf16>
    %166 = vector.shape_cast %165 : vector<1x128x64xbf16> to vector<128x64xbf16>
    %cst_55 = arith.constant dense<0.000000e+00> : vector<8x64xf32>
    %167 = tpu.matmul %164, %166, %cst_55 {dimension_numbers = #tpu.dot_dimension_numbers<[1], [0], [0], [1], [0, 0, 1, 1], [], []>} : vector<8x128xbf16>, vector<128x64xbf16>, vector<8x64xf32> -> vector<8x64xf32>
    %168 = arith.addf %167, %136 : vector<8x64xf32>
    %c0_56 = arith.constant 0 : index
    %c0_57 = arith.constant 0 : index
    %169 = vector.load %arg12[%c0_56, %c0_57] : memref<8x64xf32, #tpu.memory_space<vmem>>, vector<8x64xf32>
    tpu.vector_store %arg12[%c0_56, %c0_57], %168 {strides = array<i32>} : memref<8x64xf32, #tpu.memory_space<vmem>>, vector<8x64xf32>,
    %c1_i32 = arith.constant 1 : i32
    %170 = arith.cmpi eq, %arg0, %c1_i32 : i32
    %171 = arith.extui %170 : i1 to i32
    %c0_i32_58 = arith.constant 0 : i32
    %172 = arith.cmpi ne, %171, %c0_i32_58 : i32
    scf.if %172 {
      %c0_59 = arith.constant 0 : index
      %c0_60 = arith.constant 0 : index
      %173 = vector.load %arg10[%c0_59, %c0_60] : memref<1x64xf32, #tpu.memory_space<vmem>>, vector<1x64xf32>
      %174 = arith.mulf %168, %168 : vector<8x64xf32>
      %cst_61 = arith.constant dense<0.000000e+00> : vector<8xf32>
      %175 = vector.multi_reduction <add>, %174, %cst_61 [1] : vector<8x64xf32> to vector<8xf32>
      %176 = vector.shape_cast %175 : vector<8xf32> to vector<8x1xf32>
      %cst_62 = arith.constant 6.400000e+01 : f32
      %177 = vector.broadcast %cst_62 : f32 to vector<8x1xf32>
      %178 = arith.divf %176, %177 : vector<8x1xf32>
      %cst_63 = arith.constant 9.99999997E-7 : f32
      %179 = vector.broadcast %cst_63 : f32 to vector<8x1xf32>
      %180 = arith.addf %178, %179 : vector<8x1xf32>
      %181 = math.rsqrt %180 : vector<8x1xf32>
      %182 = vector.broadcast %181 : vector<8x1xf32> to vector<8x64xf32>
      %183 = arith.mulf %168, %182 : vector<8x64xf32>
      %184 = vector.broadcast %173 : vector<1x64xf32> to vector<8x64xf32>
      %185 = arith.mulf %183, %184 : vector<8x64xf32>
      %c0_64 = arith.constant 0 : index
      %c0_65 = arith.constant 0 : index
      %186 = vector.load %arg11[%c0_64, %c0_65] : memref<8x64xf32, #tpu.memory_space<vmem>>, vector<8x64xf32>
      tpu.vector_store %arg11[%c0_64, %c0_65], %185 {strides = array<i32>} : memref<8x64xf32, #tpu.memory_space<vmem>>, vector<8x64xf32>,
    } else {
    }
    return
  }
  func.func @transform_0(%arg0: i32) -> (i32, i32) {
    %c0_i32 = arith.constant 0 : i32
    %c0_i32_0 = arith.constant 0 : i32
    %c0_i32_1 = arith.constant 0 : i32
    return %c0_i32, %c0_i32_0 : i32, i32
  }
  func.func @transform_1(%arg0: i32) -> (i32, i32) {
    %c0_i32 = arith.constant 0 : i32
    %c0_i32_0 = arith.constant 0 : i32
    %c0_i32_1 = arith.constant 0 : i32
    return %c0_i32, %c0_i32_0 : i32, i32
  }
  func.func @transform_2(%arg0: i32) -> (i32, i32) {
    %c0_i32 = arith.constant 0 : i32
    %c0_i32_0 = arith.constant 0 : i32
    %c0_i32_1 = arith.constant 0 : i32
    return %c0_i32, %c0_i32_0 : i32, i32
  }
  func.func @transform_3(%arg0: i32) -> (i32, i32, i32) {
    %c0_i32 = arith.constant 0 : i32
    %c0_i32_0 = arith.constant 0 : i32
    %c0_i32_1 = arith.constant 0 : i32
    return %arg0, %c0_i32, %c0_i32_0 : i32, i32, i32
  }
  func.func @transform_4(%arg0: i32) -> (i32, i32, i32) {
    %c0_i32 = arith.constant 0 : i32
    %c0_i32_0 = arith.constant 0 : i32
    %c0_i32_1 = arith.constant 0 : i32
    return %arg0, %c0_i32, %c0_i32_0 : i32, i32, i32
  }
  func.func @transform_5(%arg0: i32) -> (i32, i32, i32) {
    %c0_i32 = arith.constant 0 : i32
    %c0_i32_0 = arith.constant 0 : i32
    %c0_i32_1 = arith.constant 0 : i32
    return %arg0, %c0_i32, %c0_i32_0 : i32, i32, i32
  }
  func.func @transform_6(%arg0: i32) -> (i32, i32, i32) {
    %c0_i32 = arith.constant 0 : i32
    %c0_i32_0 = arith.constant 0 : i32
    %c0_i32_1 = arith.constant 0 : i32
    return %arg0, %c0_i32, %c0_i32_0 : i32, i32, i32
  }
  func.func @transform_7(%arg0: i32) -> (i32, i32, i32) {
    %c0_i32 = arith.constant 0 : i32
    %c0_i32_0 = arith.constant 0 : i32
    %c0_i32_1 = arith.constant 0 : i32
    return %arg0, %c0_i32, %c0_i32_0 : i32, i32, i32
  }
  func.func @transform_8(%arg0: i32) -> (i32, i32, i32) {
    %c0_i32 = arith.constant 0 : i32
    %c0_i32_0 = arith.constant 0 : i32
    %c0_i32_1 = arith.constant 0 : i32
    return %arg0, %c0_i32, %c0_i32_0 : i32, i32, i32
  }
  func.func @transform_9(%arg0: i32) -> (i32, i32) {
    %c0_i32 = arith.constant 0 : i32
    %c0_i32_0 = arith.constant 0 : i32
    %c0_i32_1 = arith.constant 0 : i32
    return %c0_i32, %c0_i32_0 : i32, i32
  }
  func.func @transform_10(%arg0: i32) -> (i32, i32) {
    %c0_i32 = arith.constant 0 : i32
    %c0_i32_0 = arith.constant 0 : i32
    %c0_i32_1 = arith.constant 0 : i32
    return %c0_i32, %c0_i32_0 : i32, i32
  }
}

</mosaic_0001>

<bundles_post_ra>
// kernel: llama_forward.1
= control target key start
LH: loop header
LB: loop body
LE: loop exit
PB: predicated region body
PF: predicated region fallthrough
CT: control target
= control target key end

     0   :  { %15 = vsyncpa [#allocation4], 0  ;;  %s1596_s13 = smov 0   ;;  %s1804_s0 = inlined_call_operand.vmem [shape: f32[8,64], index: 0, kind: input, shape index: {}]   ;;  %s1805_s1 = inlined_call_operand.vmem [shape: f32[8,16], index: 1, kind: input, shape index: {}]   ;;  %s1806_s2 = inlined_call_operand.vmem [shape: f32[8,16], index: 2, kind: input, shape index: {}]   ;;  %s1807_s3 = inlined_call_operand.vmem [shape: f32[2,1,64], index: 3, kind: input, shape index: {}]   ;;  %s1808_s4 = inlined_call_operand.vmem [shape: f32[2,1,64], index: 4, kind: input, shape index: {}]   ;;  %s1809_s5 = inlined_call_operand.vmem [shape: bf16[2,64,128], index: 5, kind: input, shape index: {}]   ;;  %s1810_s6 = inlined_call_operand.vmem [shape: bf16[2,64,64], index: 6, kind: input, shape index: {}]   ;;  %s1811_s7 = inlined_call_operand.vmem [shape: bf16[2,64,256], index: 7, kind: input, shape index: {}]   ;;  %s1812_s8 = inlined_call_operand.vmem [shape: bf16[2,128,64], index: 8, kind: input, shape index: {}]   ;;  %s1813_s9 = inlined_call_operand.vmem [shape: f32[1,64], index: 9, kind: input, shape index: {}]   ;;  %s1814_s10 = inlined_call_operand.hbm [shape: f32[8,64], index: 10, kind: output, shape index: {}]  }
   0x1 LB: > { %s1602_s14 = sadd.s32 4294967295, %s1523_s13   ;;  %p1268_p0 = scmp.ge.s32.totalorder %s1523_s13, 1  ;;  %s1523_s13 = sphi %s1596_s13, %s21_s13  }
   0x2   : > { %p354_p1 = scmp.lt.s32.totalorder %s1523_s13, 3 }
   0x4   : > { %p355_p2 = pnand %p1268_p0, %p354_p1 }
   0x5   : > { %p408_p3 = scmp.lt.s32.totalorder (!%p355_p2), %s1602_s14, 1  ;;  %p1277_p4 = scmp.ne.s32.totalorder (!%p355_p2), %s1602_s14, 0 }
   0x6   : > { %358 = sbr.rel (%p355_p2) target bundleno = 2440 (0x988), region = 60 }
   0xb   : > { %s1608_s15 = scalar_select %p408_p3, %s1602_s14, 1 }
   0xc   : > { %438 = sbr.rel (%p1277_p4) target bundleno = 19 (0x13), region = 64 }
   0xd   : > { %s410_s18 = scalar_lea.vmem %s1807_s3, %s1608_s15  ;;  %s413_s21 = scalar_lea.vmem %s1808_s4, %s1608_s15 }
   0xe   : > { %s1396_s22 = sshll.u32 %s1608_s15, 5  ;;  %s1398_s23 = sshll.u32 %s1608_s15, 6 }
   0xf   : > { %s418_s26 = scalar_lea.vmem %s1809_s5, %s1396_s22  ;;  %s1626_s29 = scalar_lea.vmem %s1810_s6, %s1396_s22 }
  0x10   : > { %s1631_s12 = scalar_lea.vmem %s1811_s7, %s1398_s23  ;;  %s1636_s19 = scalar_lea.vmem %s1812_s8, %s1398_s23 }
  0x11   : > { %v439_v0 = vld [vmem:[%s1804_s0] sm:$0xff]  ;;  %vm440_vm0 = vcmask 523264  }
  0x12   : > { %441 = vst.msk [vmem:[#allocation2] sm:$0xff] %vm440_vm0, %v439_v0 }
  0x13 PF: > { %vm445_vm1 = vcmask 523264   ;;  %v1525_v4 = vmov 64.0   ;;  %v1403_v6 = vld [vmem:[%s418_s26 + $0x18] sm:$0xff]  ;;  %v1402_v8 = vld [vmem:[%s418_s26 + $0x10] sm:$0xff]  ;;  %v1401_v10 = vld [vmem:[%s418_s26 + $0x8] sm:$0xff]  ;;  %s1526_s25 = smov 104   ;;  %v526_v0 = vlaneseq }
  0x14   : > { %1456 = vrcp.f32 %v1525_v4  ;;  %513 = vmatpush.bf16.msra.mxu0 %v1403_v6  ;;  %v1400_v12 = vld [vmem:[%s418_s26] sm:$0xff]  ;;  %s1527_s26 = smov 72   ;;  %s1528_s27 = smov 56   ;;  %vm538_vm6 = vcmask 64512   ;;  %vm578_vm7 = vcmask 130048   ;;  %vm883_vm9 = vcmask 261120  }
  0x15   : > { %v1454_v24 = vld [vmem:[%s410_s18] ss:$0 sm:$0xff]  ;;  %s1529_s30 = smov 64   ;;  %s1530_s11 = smov 120   ;;  %vm885_vm10 = vcmask 392192  }
  0x16   : > { %v522_v31 = vld [vmem:[%s1805_s1] sm:$0xff]  ;;  %s1531_s16 = smov 16   ;;  %s1532_s17 = smov 8  }
  0x17   : > { %v524_v32 = vmul.f32 0.25, %v522_v31  ;;  %s1533_s20 = smov 40   ;;  %v523_v34 = vld [vmem:[%s1806_s2] sm:$0xff]  ;;  %s1534_s23 = smov 88  }
  0x18   : > { %514 = vmatpush.bf16.msra.mxu0 %v1402_v8  ;;  %v525_v38 = vmul.f32 0.25, %v523_v34  ;;  %s1538_s18 = smov 48   ;;  %s1539_s28 = smov 96  }
  0x19   : > { %v1642_v1 = vld [vmem:[#allocation2] sm:$0xff]  ;;  %p1391_p5 = scmp.ne.s32.totalorder %s1602_s14, 1 }
  0x1a   : > { %v444_v2 = vmul.f32 %v1642_v1, %v1642_v1  ;;  %v1457_v5 = vpop.eup %1456 }
  0x1b   : > { %v450_v7 = vmul.f32 64.0, %v1457_v5  ;;  %vm454_vm2 = vweird.f32 %v1457_v5 }
  0x1c   : > { %v446_v3 = vsel %vm445_vm1, %v444_v2, 0.0  ;;  %515 = vmatpush.bf16.msra.mxu0 %v1401_v10  ;;  %v1694_v2 = vshrl.u32 %v526_v0, 7 }
  0x1d   : > { %447 = vadd.xlane.f32.xlu0 %v446_v3  ;;  %v451_v9 = vsub.f32 1.0, %v450_v7  ;;  %v1696_v3 = vand.u32 127, %v526_v0 }
  0x1f   : > { %v452_v11 = vmul.f32 %v1457_v5, %v451_v9  ;;  %vm530_vm8 = vcmp.le.s32.totalorder %v1696_v3, %v1694_v2 }
  0x20   : > { %516 = vmatpush.bf16.msra.mxu0 %v1400_v12 }
  0x21   : > { %v453_v13 = vadd.f32 %v1457_v5, %v452_v11 }
  0x23   : > { %v1647_v14 = vsel %vm454_vm2, %v1457_v5, %v453_v13 }
  0x90   : > { %v448_v15 = vpop.xlane.xlu0 %447 }
  0x91   : > { %v456_v16 = vmul.f32 %v1647_v14, %v448_v15 }
  0x93   : > { %v457_v17 = vadd.f32 1e-06, %v456_v16 }
  0x95   : > { %1458 = vrsqrt.f32 %v457_v17  ;;  %vm464_vm4 = vweird.f32 %v457_v17 }
  0x9b   : > { %v1459_v18 = vpop.eup %1458 }
  0x9c   : > { %v459_v19 = vmul.f32 %v1459_v18, %v457_v17  ;;  %vm465_vm3 = vweird.f32 %v1459_v18 }
  0x9d   : > { %vm466_vm5 = vmor %vm464_vm4, %vm465_vm3 }
  0x9e   : > { %v460_v20 = vmul.f32 %v1459_v18, %v459_v19 }
  0xa0   : > { %v461_v21 = vmul.f32 0.5, %v460_v20 }
  0xa2   : > { %v462_v22 = vsub.f32 1.5, %v461_v21 }
  0xa4   : > { %v463_v23 = vmul.f32 %v1459_v18, %v462_v22 }
  0xa6   : > { %v467_v25 = vsel %vm466_vm5, %v1459_v18, %v463_v23 }
  0xa7   : > { %v468_v26 = vmul.f32 %v467_v25, %v1642_v1 }
  0xa9   : > { %v472_v27 = vmul.f32 %v1454_v24, %v468_v26 }
  0xab   : > { %v473_v28 = vpack.c.bf16 %v472_v27, %v472_v27 }
  0xad   : > { %1294 = vmatmul.msk.bf16.vlgmr.msra.gmra.mxu0 %vm445_vm1, %v473_v28 }
 0x12a   : > { %v1657_v29 = vpop.f32.mrf.mxu0 }
 0x12b   : > { %642 = vrot.lane.b32.xlu2 %v1657_v29, %s1526_s25  ;;  %535 = vrot.lane.b32.xlu1 %v1657_v29, %s1527_s26  ;;  %s1535_s25 = smov 112   ;;  %s1536_s26 = smov 80   ;;  %v572_v58 = vmul.f32 %v524_v32, %v1657_v29 }
 0x12c   : > { %532 = vrot.lane.b32.xlu0 %v1657_v29, %s1528_s27  ;;  %s1537_s27 = smov 32  }
 0x132   : > { %v520_v30 = vpop.f32.mrf.mxu0 }
 0x133   : > { %541 = vrot.lane.b32.xlu2 %v522_v31, %s1529_s30  ;;  %565 = vrot.lane.b32.xlu1 %v1657_v29, %s1530_s11 }
 0x13b   : > { %647 = vrot.lane.b32.xlu2 %v524_v32, %s1531_s16 }
 0x143   : > { %568 = vrot.lane.b32.xlu2 %v1657_v29, %s1532_s17 }
 0x14b   : > { %551 = vrot.lane.b32.xlu2 %v1657_v29, %s1533_s20 }
 0x185   : > { %v643_v39 = vpop.permute.xlu2 %642 }
 0x18d   : > { %v542_v43 = vpop.permute.xlu2 %541 }
 0x18e   : > { %v544_v44 = vmul.f32 %v542_v43, %v1657_v29 }
 0x195   : > { %v648_v45 = vpop.permute.xlu2 %647 }
 0x196   : > { %v650_v48 = vmul.f32 %v648_v45, %v1657_v29 }
 0x19d   : > { %v1669_v33 = vpop.permute.xlu1 %535  ;;  %v569_v50 = vpop.permute.xlu2 %568 }
 0x19e   : > { %v533_v35 = vpop.permute.xlu0 %532 }
 0x19f   : > { %v539_v36 = vsel %vm538_vm6, %v533_v35, %v1669_v33 }
 0x1a0   : > { %v545_v37 = vmul.f32 %v539_v36, %v523_v34 }
 0x1a2   : > { %547 = vrot.lane.b32.xlu1 %v545_v37, %s1529_s30 }
 0x1a5   : > { %v566_v40 = vpop.permute.xlu1 %565  ;;  %v552_v52 = vpop.permute.xlu2 %551 }
 0x1a6   : > { %v645_v41 = vsel %vm538_vm6, %v643_v39, %v566_v40  ;;  %v554_v53 = vsel %vm538_vm6, %v552_v52, %v533_v35  ;;  %v571_v55 = vsel %vm538_vm6, %v566_v40, %v569_v50 }
 0x1a7   : > { %v651_v42 = vmul.f32 %v645_v41, %v525_v38  ;;  %v559_v54 = vmul.f32 %v554_v53, %v523_v34  ;;  %v573_v56 = vmul.f32 %v571_v55, %v525_v38 }
 0x1a9   : > { %v574_v59 = vadd.f32 %v573_v56, %v572_v58 }
 0x1aa   : > { %653 = vrot.lane.b32.xlu1 %v651_v42, %s1531_s16 }
 0x214   : > { %v548_v46 = vpop.permute.xlu1 %547 }
 0x215   : > { %v550_v47 = vadd.f32 %v548_v46, %v544_v44 }
 0x217   : > { %576 = vrot.lane.b32.xlu0 %v550_v47, %s1529_s30 }
 0x21c   : > { %v654_v49 = vpop.permute.xlu1 %653 }
 0x21d   : > { %v656_v51 = vadd.f32 %v654_v49, %v650_v48 }
 0x21f   : > { %717 = vrot.lane.b32.xlu0 %v1657_v29, %s1534_s23  ;;  %658 = vrot.lane.b32.xlu1 %v656_v51, %s1535_s25 }
 0x227   : > { %555 = vrot.lane.b32.xlu0 %v522_v31, %s1536_s26 }
 0x22f   : > { %561 = vrot.lane.b32.xlu0 %v559_v54, %s1536_s26 }
 0x237   : > { %721 = vrot.lane.b32.xlu0 %v524_v32, %s1537_s27 }
 0x23f   : > { %800 = vrot.lane.b32.xlu0 %v524_v32, %s1538_s18 }
 0x289   : > { %v577_v57 = vpop.permute.xlu0 %576 }
 0x28a   : > { %1295 = vmatpush.xpose.msk.msra.mxu3 %vm578_vm7, %v577_v57 }
 0x28d   : > { %1296 = vmatmul.msk.f32.vlgmr.msra.gmra.mxu3 %vm578_vm7, %v574_v59 }
 0x28e   : > { %1298 = vmatpush.xpose.msk.msrb.mxu3 %vm578_vm7, %v577_v57 }
 0x291   : > { %v718_v60 = vpop.permute.xlu0 %717  ;;  %v659_v63 = vpop.permute.xlu1 %658 }
 0x292   : > { %v720_v61 = vsel %vm538_vm6, %v718_v60, %v643_v39  ;;  %v799_v13 = vsel %vm538_vm6, %v1669_v33, %v718_v60 }
 0x293   : > { %v725_v62 = vmul.f32 %v720_v61, %v525_v38  ;;  %v804_v15 = vmul.f32 %v799_v13, %v525_v38 }
 0x295   : > { %727 = vrot.lane.b32.xlu0 %v725_v62, %s1537_s27  ;;  %1299 = vmatmul.msk.f32.vlgmr.msrb.gmra.mxu3 %vm578_vm7, %v659_v63 }
 0x299   : > { %v556_v7 = vpop.permute.xlu0 %555 }
 0x29a   : > { %v558_v17 = vmul.f32 %v556_v7, %v1657_v29 }
 0x2a1   : > { %v562_v11 = vpop.permute.xlu0 %561 }
 0x2a2   : > { %v564_v18 = vadd.f32 %v562_v11, %v558_v17  ;;  %v1405_v11 = vld [vmem:[%s1626_s29 + $0x8] sm:$0xff] }
 0x2a9   : > { %v722_v12 = vpop.permute.xlu0 %721 }
 0x2aa   : > { %v724_v20 = vmul.f32 %v722_v12, %v1657_v29  ;;  %v1404_v12 = vld [vmem:[%s1626_s29] sm:$0xff] }
 0x2b1   : > { %v801_v16 = vpop.permute.xlu0 %800 }
 0x2b2   : > { %v803_v36 = vmul.f32 %v801_v16, %v1657_v29 }
 0x307   : > { %v728_v19 = vpop.permute.xlu0 %727 }
 0x308   : > { %v730_v21 = vadd.f32 %v728_v19, %v724_v20 }
 0x310   : > { %v601_v4 = vpop.f32.mrf.mxu3 }
 0x311   : > { %v604_v5 = vsel %vm530_vm8, %v601_v4, -1e+30 }
 0x312   : > { %v605_v6 = vsel %vm538_vm6, %v604_v5, -inf }
 0x313   : > { %606 = vmax.xlane.f32.xlu1 %v605_v6 }
 0x318   : > { %v679_v8 = vpop.f32.mrf.mxu3 }
 0x319   : > { %v682_v9 = vsel %vm530_vm8, %v679_v8, -1e+30 }
 0x31a   : > { %v683_v10 = vsel %vm538_vm6, %v682_v9, -inf }
 0x31b   : > { %684 = vmax.xlane.f32.xlu2 %v683_v10  ;;  %v1406_v10 = vld [vmem:[%s1626_s29 + $0x10] sm:$0xff] }
 0x333   : > { %806 = vrot.lane.b32.xlu2 %v804_v15, %s1538_s18 }
 0x33b   : > { %735 = vrot.lane.b32.xlu2 %v564_v18, %s1538_s18 }
 0x343   : > { %732 = vrot.lane.b32.xlu2 %v730_v21, %s1539_s28 }
 0x386   : > { %v607_v22 = vpop.xlane.xlu1 %606 }
 0x387   : > { %v608_v23 = vsub.f32 %v604_v5, %v607_v22 }
 0x389   : > { %v609_v24 = vmul.f32 1.442695, %v608_v23 }
 0x38b   : > { %1460 = vpow2.f32 %v609_v24 }
 0x38e   : > { %v685_v25 = vpop.xlane.xlu2 %684 }
 0x38f   : > { %v686_v26 = vsub.f32 %v682_v9, %v685_v25  ;;  %v1407_v9 = vld [vmem:[%s1626_s29 + $0x18] sm:$0xff] }
 0x391   : > { %v1461_v27 = vpop.eup %1460  ;;  %v687_v28 = vmul.f32 1.442695, %v686_v26  ;;  %v1350_v26 = vld [vmem:[%s1631_s12 + $0x30] sm:$0xf] }
 0x392   : > { %v611_v30 = vsel %vm538_vm6, %v1461_v27, 0.0 }
 0x393   : > { %1462 = vpow2.f32 %v687_v28  ;;  %612 = vadd.xlane.f32.xlu1 %v611_v30  ;;  %v1414_v28 = vld [vmem:[%s1631_s12 + $0x34] sm:$0xf] }
 0x396   : > { %v807_v31 = vpop.permute.xlu2 %806 }
 0x397   : > { %v809_v37 = vadd.f32 %v807_v31, %v803_v36  ;;  %v1352_v31 = vld [vmem:[%s1631_s12 + $0x38] sm:$0xf0]  ;;  %v1344_v36 = vld [vmem:[%s1631_s12 + $0x28] sm:$0xf0] }
 0x399   : > { %v1463_v32 = vpop.eup %1462 }
 0x39a   : > { %v689_v33 = vsel %vm538_vm6, %v1463_v32, 0.0 }
 0x39b   : > { %690 = vadd.xlane.f32.xlu0 %v689_v33  ;;  %v1413_v33 = vld [vmem:[%s1631_s12 + $0x24] sm:$0xf0] }
 0x39e   : > { %v736_v34 = vpop.permute.xlu2 %735 }
 0x39f   : > { %1301 = vmatpush.xpose.msk.msra.mxu1 %vm578_vm7, %v736_v34 }
 0x3a6   : > { %v733_v35 = vpop.permute.xlu2 %732 }
 0x3a7   : > { %1302 = vmatmul.msk.f32.vlgmr.msra.gmra.mxu1 %vm578_vm7, %v733_v35 }
 0x3ac   : > { %616 = vrot.lane.b32.xlu1 %v1657_v29, %s1537_s27 }
 0x3b4   : > { %811 = vrot.lane.b32.xlu1 %v809_v37, %s1536_s26 }
 0x406   : > { %v613_v38 = vpop.xlane.xlu1 %612 }
 0x407   : > { %1464 = vrcp.f32 %v613_v38  ;;  %v1334_v38 = vld [vmem:[%s1631_s12 + $0x10] sm:$0xf] }
 0x40d   : > { %v1465_v40 = vpop.eup %1464 }
 0x40e   : > { %v691_v39 = vpop.xlane.xlu0 %690  ;;  %v615_v42 = vmul.f32 %v1465_v40, %v1461_v27  ;;  %v1415_v27 = vld [vmem:[%s1631_s12 + $0x34] sm:$0xf0]  ;;  %v1410_v40 = vld [vmem:[%s1631_s12 + $0x14] sm:$0xf] }
 0x40f   : > { %1466 = vrcp.f32 %v691_v39  ;;  %v1351_v30 = vor.u32 %v1415_v27, %v1350_v26  ;;  %v1411_v39 = vld [vmem:[%s1631_s12 + $0x14] sm:$0xf0] }
 0x411   : > { %1014 = vmatpush.bf16.msrb.mxu0 %v1351_v30 }
 0x415   : > { %v1467_v43 = vpop.eup %1466 }
 0x416   : > { %v693_v47 = vmul.f32 %v1467_v43, %v1463_v32  ;;  %v1355_v32 = vor.u32 %v1414_v28, %v1352_v31 }
 0x41e   : > { %v617_v41 = vpop.permute.xlu1 %616 }
 0x41f   : > { %637 = vmatpush.msra.mxu2 %v617_v41 }
 0x420   : > { %1297 = vmatmul.msk.f32.vlgmr.msra.gmra.mxu2 %vm538_vm6, %v615_v42  ;;  %v1336_v42 = vld [vmem:[%s1631_s12 + $0x18] sm:$0xf0] }
 0x421   : > { %712 = vmatpush.msrb.mxu2 %v617_v41  ;;  %v1335_v41 = vor.u32 %v1411_v39, %v1334_v38  ;;  %v1339_v43 = vor.u32 %v1410_v40, %v1336_v42 }
 0x423   : > { %1304 = vmatpush.xpose.msk.msra.mxu2 %vm578_vm7, %v736_v34  ;;  %v1412_v34 = vld [vmem:[%s1631_s12 + $0x24] sm:$0xf] }
 0x424   : > { %v758_v44 = vpop.f32.mrf.mxu1  ;;  %v1347_v37 = vor.u32 %v1412_v34, %v1344_v36 }
 0x425   : > { %v761_v45 = vsel %vm530_vm8, %v758_v44, -1e+30  ;;  %v1326_v44 = vld [vmem:[%s1631_s12] sm:$0xf] }
 0x426   : > { %v762_v46 = vsel %vm538_vm6, %v761_v45, -inf  ;;  %v812_v48 = vpop.permute.xlu1 %811 }
 0x427   : > { %763 = vmax.xlane.f32.xlu2 %v762_v46  ;;  %v1408_v46 = vld [vmem:[%s1631_s12 + $0x4] sm:$0xf] }
 0x428   : > { %1300 = vmatmul.msk.f32.vlgmr.msrb.gmra.mxu2 %vm538_vm6, %v693_v47 }
 0x429   : > { %1027 = vmatpush.bf16.msrb.mxu2 %v1355_v32 }
 0x42d   : > { %1028 = vmatpush.bf16.msrb.mxu2 %v1347_v37 }
 0x430   : > { %1305 = vmatmul.msk.f32.vlgmr.msra.gmra.mxu2 %vm578_vm7, %v812_v48  ;;  %v1328_v48 = vld [vmem:[%s1631_s12 + $0x8] sm:$0xf0] }
 0x431   : > { %1029 = vmatpush.bf16.msrb.mxu2 %v1339_v43 }
 0x49a   : > { %v764_v49 = vpop.xlane.xlu2 %763 }
 0x49b   : > { %v765_v50 = vsub.f32 %v761_v45, %v764_v49  ;;  %v1409_v45 = vld [vmem:[%s1631_s12 + $0x4] sm:$0xf0]  ;;  %v1331_v49 = vor.u32 %v1408_v46, %v1328_v48 }
 0x49c   : > { %v1327_v47 = vor.u32 %v1409_v45, %v1326_v44 }
 0x49d   : > { %v766_v51 = vmul.f32 1.442695, %v765_v50  ;;  %1030 = vmatpush.bf16.msrb.mxu2 %v1331_v49 }
 0x49f   : > { %1468 = vpow2.f32 %v766_v51 }
 0x4a3   : > { %v639_v52 = vpop.f32.mrf.mxu2 }
 0x4a5   : > { %v1469_v53 = vpop.eup %1468 }
 0x4a6   : > { %v768_v54 = vsel %vm538_vm6, %v1469_v53, 0.0 }
 0x4a7   : > { %769 = vadd.xlane.f32.xlu0 %v768_v54 }
 0x4ab   : > { %v714_v55 = vpop.f32.mrf.mxu2 }
 0x4b3   : > { %v832_v56 = vpop.f32.mrf.mxu2 }
 0x4b4   : > { %v835_v57 = vsel %vm530_vm8, %v832_v56, -1e+30 }
 0x4b5   : > { %v836_v58 = vsel %vm538_vm6, %v835_v57, -inf }
 0x4b6   : > { %837 = vmax.xlane.f32.xlu1 %v836_v58 }
 0x51a   : > { %v770_v0 = vpop.xlane.xlu0 %769 }
 0x529   : > { %v838_v59 = vpop.xlane.xlu1 %837 }
 0x52a   : > { %v839_v60 = vsub.f32 %v835_v57, %v838_v59  ;;  %v1455_v59 = vld [vmem:[%s413_s21] ss:$0 sm:$0xff] }
 0x52c   : > { %v840_v61 = vmul.f32 1.442695, %v839_v60 }
 0x52e   : > { %1470 = vpow2.f32 %v840_v61 }
 0x52f   : > { %1472 = vrcp.f32 %v770_v0  ;;  %v1423_v0 = vld [vmem:[%s1636_s19 + $0x38] sm:$0xff] }
 0x534   : > { %v1471_v62 = vpop.eup %1470 }
 0x535   : > { %v842_v63 = vsel %vm538_vm6, %v1471_v62, 0.0  ;;  %v1473_v2 = vpop.eup %1472 }
 0x536   : > { %843 = vadd.xlane.f32.xlu0 %v842_v63  ;;  %v772_v5 = vmul.f32 %v1473_v2, %v1469_v53  ;;  %v1421_v2 = vld [vmem:[%s1636_s19 + $0x28] sm:$0xff] }
 0x54a   : > { %773 = vrot.lane.b32.xlu0 %v1657_v29, %s1531_s16 }
 0x552   : > { %871 = vrot.lane.b32.xlu0 %v714_v55, %s1531_s16 }
 0x5a9   : > { %v844_v4 = vpop.xlane.xlu0 %843 }
 0x5aa   : > { %1474 = vrcp.f32 %v844_v4  ;;  %v1422_v4 = vld [vmem:[%s1636_s19 + $0x30] sm:$0xff] }
 0x5b0   : > { %v1475_v3 = vpop.eup %1474 }
 0x5b1   : > { %v846_v7 = vmul.f32 %v1475_v3, %v1471_v62  ;;  %v1420_v3 = vld [vmem:[%s1636_s19 + $0x20] sm:$0xff] }
 0x5bc   : > { %v774_v6 = vpop.permute.xlu0 %773 }
 0x5bd   : > { %794 = vmatpush.msra.mxu3 %v774_v6  ;;  %865 = vmatpush.msrb.mxu1 %v774_v6  ;;  %v1418_v6 = vld [vmem:[%s1636_s19 + $0x10] sm:$0xff] }
 0x5be   : > { %1303 = vmatmul.msk.f32.vlgmr.msra.gmra.mxu3 %vm538_vm6, %v772_v5  ;;  %1306 = vmatmul.msk.f32.vlgmr.msrb.gmra.mxu1 %vm538_vm6, %v846_v7  ;;  %v1419_v5 = vld [vmem:[%s1636_s19 + $0x18] sm:$0xff]  ;;  %v1417_v7 = vld [vmem:[%s1636_s19 + $0x8] sm:$0xff] }
 0x5bf   : > { %927 = vmatpush.bf16.msrb.mxu3 %v1407_v9  ;;  %1122 = vmatpush.bf16.msra.mxu1 %v1423_v0 }
 0x5c3   : > { %928 = vmatpush.bf16.msrb.mxu3 %v1406_v10  ;;  %1123 = vmatpush.bf16.msra.mxu1 %v1422_v4 }
 0x5c4   : > { %v872_v13 = vpop.permute.xlu0 %871 }
 0x5c5   : > { %v882_v16 = vsel %vm578_vm7, %v639_v52, %v872_v13 }
 0x5c7   : > { %929 = vmatpush.bf16.msrb.mxu3 %v1405_v11  ;;  %1124 = vmatpush.bf16.msra.mxu1 %v1421_v2 }
 0x5cb   : > { %930 = vmatpush.bf16.msrb.mxu3 %v1404_v12  ;;  %1125 = vmatpush.bf16.msra.mxu1 %v1420_v3 }
 0x5cf   : > { %1126 = vmatpush.bf16.msra.mxu1 %v1419_v5 }
 0x5d3   : > { %1127 = vmatpush.bf16.msra.mxu1 %v1418_v6 }
 0x5d7   : > { %1128 = vmatpush.bf16.msra.mxu1 %v1417_v7 }
 0x63b   : > { %v867_v29 = vpop.f32.mrf.mxu1 }
 0x63c   : > { %879 = vrot.lane.b32.xlu1 %v867_v29, %s1538_s18  ;;  %v1416_v29 = vld [vmem:[%s1636_s19] sm:$0xff] }
 0x63d   : > { %1129 = vmatpush.bf16.msra.mxu1 %v1416_v29 }
 0x641   : > { %v796_v8 = vpop.f32.mrf.mxu3 }
 0x642   : > { %875 = vrot.lane.b32.xlu2 %v796_v8, %s1537_s27 }
 0x69c   : > { %v876_v15 = vpop.permute.xlu2 %875 }
 0x69d   : > { %v884_v17 = vsel %vm883_vm9, %v882_v16, %v876_v15 }
 0x6ae   : > { %v880_v18 = vpop.permute.xlu1 %879 }
 0x6af   : > { %v886_v19 = vsel %vm885_vm10, %v884_v17, %v880_v18 }
 0x6b0   : > { %v887_v20 = vpack.c.bf16 %v886_v19, %v886_v19 }
 0x6b2   : > { %1323 = vmatmul.msk.bf16.vlgmr.msrb.gmra.mxu3 %vm445_vm1, %v887_v20 }
 0x735   : > { %v932_v21 = vpop.f32.mrf.mxu3 }
 0x736   : > { %v1750_v22 = vadd.f32 %v932_v21, %v1642_v1  ;;  %v1342_v1 = vld [vmem:[%s1631_s12 + $0x20] sm:$0xf] }
 0x737   : > { %v1343_v35 = vor.u32 %v1413_v33, %v1342_v1 }
 0x738   : > { %v937_v23 = vmul.f32 %v1750_v22, %v1750_v22 }
 0x739   : > { %1015 = vmatpush.bf16.msrb.mxu0 %v1343_v35 }
 0x73a   : > { %v938_v24 = vsel %vm445_vm1, %v937_v23, 0.0 }
 0x73b   : > { %939 = vadd.xlane.f32.xlu0 %v938_v24 }
 0x73d   : > { %v934_v25 = vpop.f32.mrf.mxu3  ;;  %1016 = vmatpush.bf16.msrb.mxu0 %v1335_v41 }
 0x741   : > { %1017 = vmatpush.bf16.msrb.mxu0 %v1327_v47 }
 0x7ae   : > { %v940_v50 = vpop.xlane.xlu0 %939 }
 0x7af   : > { %v941_v51 = vmul.f32 %v940_v50, %v1647_v14 }
 0x7b1   : > { %v942_v52 = vadd.f32 1e-06, %v941_v51 }
 0x7b3   : > { %1476 = vrsqrt.f32 %v942_v52  ;;  %vm949_vm12 = vweird.f32 %v942_v52 }
 0x7b9   : > { %v1477_v53 = vpop.eup %1476 }
 0x7ba   : > { %v944_v54 = vmul.f32 %v1477_v53, %v942_v52  ;;  %vm950_vm11 = vweird.f32 %v1477_v53 }
 0x7bb   : > { %vm951_vm13 = vmor %vm949_vm12, %vm950_vm11 }
 0x7bc   : > { %v945_v55 = vmul.f32 %v1477_v53, %v944_v54 }
 0x7be   : > { %v946_v56 = vmul.f32 0.5, %v945_v55 }
 0x7c0   : > { %v947_v57 = vsub.f32 1.5, %v946_v56 }
 0x7c2   : > { %v948_v58 = vmul.f32 %v1477_v53, %v947_v57 }
 0x7c4   : > { %v952_v60 = vsel %vm951_vm13, %v1477_v53, %v948_v58 }
 0x7c5   : > { %v953_v61 = vmul.f32 %v952_v60, %v1750_v22 }
 0x7c7   : > { %v957_v62 = vmul.f32 %v1455_v59, %v953_v61 }
 0x7c9   : > { %v958_v63 = vpack.c.bf16 %v957_v62, %v957_v62 }
 0x7cb   : > { %1356 = vmatmul.msk.bf16.vlgmr.msrb.gmra.mxu0 %vm445_vm1, %v958_v63  ;;  %1357 = vmatmul.msk.bf16.vlgmr.msrb.gmra.mxu2 %vm445_vm1, %v958_v63 }
 0x848   : > { %v1019_v8 = vpop.f32.mrf.mxu0 }
 0x849   : > { %v1358_v9 = vmul.f32 -1.442695, %v1019_v8 }
 0x84b   : > { %1478 = vpow2.f32 %v1358_v9 }
 0x84e   : > { %v1032_v10 = vpop.f32.mrf.mxu2 }
 0x850   : > { %v1021_v11 = vpop.f32.mrf.mxu0 }
 0x851   : > { %v1479_v12 = vpop.eup %1478 }
 0x852   : > { %v1039_v13 = vadd.f32 1.0, %v1479_v12 }
 0x854   : > { %1480 = vrcp.f32 %v1039_v13  ;;  %v1051_v19 = vand.u32 2147483648, %v1039_v13  ;;  %v1049_v21 = vand.u32 2147483647, %v1039_v13  ;;  %vm1045_vm15 = vweird.f32 %v1039_v13 }
 0x856   : > { %v1034_v15 = vpop.f32.mrf.mxu2  ;;  %v1052_v24 = vor.u32 1.1754944e-38, %v1051_v19  ;;  %vm1050_vm2 = vcmp.eq.f32.partialorder %v1049_v21, 8.507059e+37 }
 0x85a   : > { %v1481_v16 = vpop.eup %1480 }
 0x85b   : > { %v1041_v17 = vmul.f32 %v1481_v16, %v1039_v13  ;;  %vm1046_vm14 = vweird.f32 %v1481_v16 }
 0x85c   : > { %vm1047_vm0 = vmor %vm1045_vm15, %vm1046_vm14 }
 0x85d   : > { %v1042_v18 = vsub.f32 1.0, %v1041_v17 }
 0x85f   : > { %v1043_v20 = vmul.f32 %v1481_v16, %v1042_v18 }
 0x861   : > { %v1044_v23 = vadd.f32 %v1481_v16, %v1043_v20 }
 0x863   : > { %v1048_v25 = vsel %vm1047_vm0, %v1481_v16, %v1044_v23 }
 0x864   : > { %v1053_v26 = vsel %vm1050_vm2, %v1052_v24, %v1048_v25 }
 0x865   : > { %v1055_v27 = vmul.f32 %v1053_v26, %v1019_v8 }
 0x867   : > { %v1056_v28 = vmul.f32 %v1055_v27, %v1032_v10 }
 0x869   : > { %v1057_v30 = vpack.c.bf16 %v1056_v28, %v1056_v28 }
 0x86b   : > { %1130 = vmatmul.bf16.vlgmr.msra.gmra.mxu1 %v1057_v30 }
 0x8e8   : > { %v1131_v31 = vpop.f32.mrf.mxu1 }
 0x8e9   : > { %v1132_v32 = vadd.f32 %v1131_v31, %v1750_v22 }
 0x8eb   : > { %1135 = vst.msk [vmem:[#allocation2] sm:$0xff] %vm445_vm1, %v1132_v32 }
 0x8ec   : > { %1139 = sbr.rel (%p1391_p5) target bundleno = 2435 (0x983), region = 68 }
 0x8f0   : > { %v1133_v1 = vpop.f32.mrf.mxu1 }
 0x8f1   : > { %v1141_v33 = vmul.f32 %v1132_v32, %v1132_v32  ;;  %v1482_v43 = vld [vmem:[%s1813_s9] ss:$0 sm:$0xff] }
 0x8f3   : > { %v1142_v34 = vsel %vm445_vm1, %v1141_v33, 0.0 }
 0x8f4   : > { %1143 = vadd.xlane.f32.xlu0 %v1142_v34 }
 0x967   : > { %v1144_v35 = vpop.xlane.xlu0 %1143 }
 0x968   : > { %v1145_v36 = vmul.f32 %v1144_v35, %v1647_v14 }
 0x96a   : > { %v1146_v37 = vadd.f32 1e-06, %v1145_v36 }
 0x96c   : > { %1483 = vrsqrt.f32 %v1146_v37  ;;  %vm1153_vm4 = vweird.f32 %v1146_v37 }
 0x972   : > { %v1484_v38 = vpop.eup %1483 }
 0x973   : > { %v1148_v39 = vmul.f32 %v1484_v38, %v1146_v37  ;;  %vm1154_vm3 = vweird.f32 %v1484_v38 }
 0x974   : > { %vm1155_vm5 = vmor %vm1153_vm4, %vm1154_vm3 }
 0x975   : > { %v1149_v40 = vmul.f32 %v1484_v38, %v1148_v39 }
 0x977   : > { %v1150_v41 = vmul.f32 0.5, %v1149_v40 }
 0x979   : > { %v1151_v22 = vsub.f32 1.5, %v1150_v41 }
 0x97b   : > { %v1152_v42 = vmul.f32 %v1484_v38, %v1151_v22 }
 0x97d   : > { %v1156_v44 = vsel %vm1155_vm5, %v1484_v38, %v1152_v42 }
 0x97e   : > { %v1157_v45 = vmul.f32 %v1156_v44, %v1132_v32 }
 0x980   : > { %v1161_v46 = vmul.f32 %v1482_v43, %v1157_v45 }
 0x982   : > { %1162 = vst.msk [vmem:[#allocation3] sm:$0xff] %vm445_vm1, %v1161_v46 }
 0x983 PF: > { %p1428_p6 = scmp.eq.s32.totalorder %s1602_s14, 1  ;;  %s1540_s19 = smov [#allocation3]  }
 0x984   : > { %s1169_s30 = sshll.u32 %s1540_s19, 4  ;;  %s1171_s17 = sshll.u32 %s1814_s10, 4  ;;  %s1170_s30 = int_to_ptr.vmem [resolvable:$true] %s1169_s30  ;;  %s1172_s17 = int_to_ptr.hbm [resolvable:$true] %s1171_s17 }
 0x985   : > { %1425 = dma.vmem_to_hbm [thread:$0]  (%p1428_p6), %s1170_s30, 128, %s1172_s17, [#allocation4]  }
 0x986   : > { %1518 = dma.done.wait (%p1428_p6), [#allocation4], 128  }
 0x987   : > { %1520 = vsyncadd (%p1428_p6), [#allocation4], 4294967168 }
 0x988 PF: > { %s21_s13 = sadd.s32 1, %s1523_s13  }
 0x989   : > { %p18_p7 = scmp.ge.s32.totalorder %s21_s13, 4  }
 0x98b   :  { %20 = sbr.rel (!%p18_p7) target bundleno = 1 (0x1), region = 110 }
 0x990   :  { %1185 = vsyncpa [#allocation4], 1 }
 0x991   :  { %1187 = vsyncpa [#allocation4 + $0x1], 1 }

</bundles_post_ra>
